<compile_context>
chip_gen: v6e
topology: v6e:2x2x1
jax: 0.10.0
libtpu: 0.0.40
codegen_flags: <defaults>
</compile_context>

<pallas_src>
import jax
import jax.numpy as jnp
import numpy as np
from jax.experimental import pallas as pl
from jax.experimental.pallas import tpu as pltpu


def packed_linear_kernel(xp_ref, w_ref, b_ref, o_ref):
    """Packed (interleaved-lane) linear layer tile.

    xp_ref: (rb, 128) packed input tile  (32 batch elems x 4 features per row)
    w_ref : (128, 96) block-diagonal weight (32 copies of W.T), grid-invariant
    b_ref : (1, 96)   tiled bias (bias[o] at lane 3g+o), grid-invariant
    o_ref : (rb, 96)  packed output tile (32 batch elems x 3 outputs per row)
    """
    acc = jnp.dot(
        xp_ref[...],
        w_ref[...],
        precision=jax.lax.Precision.HIGHEST,       # full-f32 MXU contraction
        preferred_element_type=jnp.float32,
    )
    o_ref[...] = (acc + b_ref[...]).astype(o_ref.dtype)


def basic_net_forward(x, weight, bias, *, rows_per_block=8192):
    """x: (B, 4) f32; weight: (3, 4) f32 (PyTorch nn.Linear layout, NOT
    pre-transposed); bias: (3,) f32.  Returns (B, 3) == x @ weight.T + bias."""
    B, in_f = x.shape
    out_f = weight.shape[0]
    assert 128 % in_f == 0, "packed layout needs in_features to divide 128"
    pack = 128 // in_f            # 32 batch elements per packed row
    lanes_in = pack * in_f        # 128
    lanes_out = pack * out_f      # 96

    # Pad the batch so it folds into whole, sublane-aligned packed rows
    # (8 rows x 32 batch elems = 256).  The copy only happens for ragged B;
    # the common aligned case stays copy-free.
    row_batch = pack * 8
    B_pad = ((B + row_batch - 1) // row_batch) * row_batch
    if B_pad != B:
        x = jnp.pad(x, ((0, B_pad - B), (0, 0)))
    n_rows = B_pad // pack

    # Free, contiguous reshape: no transpose, no extra HBM pass.
    xp = x.reshape(n_rows, lanes_in)

    # Block-diagonal weight Wbig[4g+f, 3g+o] = W[o, f]; lane-tiled bias.
    w_big = jnp.kron(jnp.eye(pack, dtype=x.dtype), weight.T.astype(x.dtype))
    b_big = jnp.tile(bias.astype(x.dtype), pack).reshape(1, lanes_out)

    # Batch tiling: 8192 packed rows = 262144 batch elements per grid step.
    rb = min(rows_per_block, n_rows)
    if rb < n_rows:
        rb = max(8, (rb // 8) * 8)                # keep sublane-aligned tiles
    grid = (pl.cdiv(n_rows, rb),)

    itemsize = jnp.dtype(x.dtype).itemsize
    cost = pl.CostEstimate(
        flops=2 * n_rows * lanes_in * lanes_out,
        transcendentals=0,
        bytes_accessed=itemsize * (n_rows * lanes_in + lanes_in * lanes_out
                                   + lanes_out + n_rows * lanes_out),
    )

    yp = pl.pallas_call(
        packed_linear_kernel,
        out_shape=jax.ShapeDtypeStruct((n_rows, lanes_out), x.dtype),
        grid=grid,
        in_specs=[
            pl.BlockSpec((rb, lanes_in), lambda i: (i, 0)),        # x streams
            pl.BlockSpec((lanes_in, lanes_out), lambda i: (0, 0)),  # W resident
            pl.BlockSpec((1, lanes_out), lambda i: (0, 0)),         # b resident
        ],
        out_specs=pl.BlockSpec((rb, lanes_out), lambda i: (i, 0)),
        compiler_params=pltpu.CompilerParams(
            dimension_semantics=("parallel",),
            vmem_limit_bytes=32 * 1024 * 1024,
        ),
        cost_estimate=cost,
    )(xp, w_big, b_big)

    # Free reshape back to row-major (B_pad, 3); slice only if we padded.
    y = yp.reshape(B_pad, out_f)
    return y if B_pad == B else y[:B]


if __name__ == "__main__":
    key = jax.random.PRNGKey(0)
    kx, kw, kb = jax.random.split(key, 3)

    B, in_f, out_f = 2, 4, 3
    bound = 1.0 / float(np.sqrt(in_f))
    x = jax.random.normal(kx, (B, in_f), dtype=jnp.float32)
    weight = jax.random.uniform(kw, (out_f, in_f), minval=-bound, maxval=bound,
                                dtype=jnp.float32)
    bias = jax.random.uniform(kb, (out_f,), minval=-bound, maxval=bound,
                              dtype=jnp.float32)

    def ref_fn(xv):
        # float64 host reference: independent of TPU matmul precision defaults.
        return (np.asarray(xv, np.float64) @ np.asarray(weight, np.float64).T
                + np.asarray(bias, np.float64))

    out = basic_net_forward(x, weight, bias)
    jax.block_until_ready(out)
    assert out.shape == (B, out_f)
    np.testing.assert_allclose(np.asarray(out, np.float64), ref_fn(x),
                               atol=2e-5, rtol=2e-5)

    # Exercise the streaming path: B=1250 pads to 1280 -> 40 packed rows,
    # 16-row tiles -> grid=(3,) with a masked ragged tail block, plus the
    # ragged-batch pad/slice path.  Weight/bias stay VMEM-resident throughout.
    B2 = 1250
    x2 = jax.random.normal(jax.random.PRNGKey(1), (B2, in_f), dtype=jnp.float32)
    out2 = basic_net_forward(x2, weight, bias, rows_per_block=16)
    jax.block_until_ready(out2)
    assert out2.shape == (B2, out_f)
    np.testing.assert_allclose(np.asarray(out2, np.float64), ref_fn(x2),
                               atol=2e-5, rtol=2e-5)

    print("KERNEL_OK")
</pallas_src>

<mosaic_0001>
module attributes {stable_mosaic.version = 11 : i64} {
  func.func @packed_linear_kernel(%arg0: i32, %arg1: memref<8x128xf32, #tpu.memory_space<vmem>>, %arg2: memref<128x96xf32, #tpu.memory_space<vmem>>, %arg3: memref<1x96xf32, #tpu.memory_space<vmem>>, %arg4: memref<8x96xf32, #tpu.memory_space<vmem>>) attributes {dimension_semantics = [#tpu.dimension_semantics<parallel>], iteration_bounds = array<i64: 1>, scalar_prefetch = 0 : i64, scratch_operands = 0 : i64, tpu.core_type = #tpu.core_type<tc>, window_params = [{transform_indices = @transform_0, window_bounds = array<i64: 8, 128>}, {pipeline_mode = #tpu.pipeline_mode<synchronous>, transform_indices = @transform_1, window_bounds = array<i64: 128, 96>}, {pipeline_mode = #tpu.pipeline_mode<synchronous>, transform_indices = @transform_2, window_bounds = array<i64: 1, 96>}, {transform_indices = @transform_3, window_bounds = array<i64: 8, 96>}]} {
    %c0 = arith.constant 0 : index
    %c0_0 = arith.constant 0 : index
    %0 = vector.load %arg1[%c0, %c0_0] : memref<8x128xf32, #tpu.memory_space<vmem>>, vector<8x128xf32>
    %c0_1 = arith.constant 0 : index
    %c0_2 = arith.constant 0 : index
    %1 = vector.load %arg2[%c0_1, %c0_2] : memref<128x96xf32, #tpu.memory_space<vmem>>, vector<128x96xf32>
    %cst = arith.constant dense<0.000000e+00> : vector<8x96xf32>
    %2 = tpu.matmul %0, %1, %cst {dimension_numbers = #tpu.dot_dimension_numbers<[1], [0], [0], [1], [0, 0, 1, 1], [], []>, precision = #tpu.contract_precision<fp32>} : vector<8x128xf32>, vector<128x96xf32>, vector<8x96xf32> -> vector<8x96xf32>
    %c0_3 = arith.constant 0 : index
    %c0_4 = arith.constant 0 : index
    %3 = vector.load %arg3[%c0_3, %c0_4] : memref<1x96xf32, #tpu.memory_space<vmem>>, vector<1x96xf32>
    %4 = vector.broadcast %3 : vector<1x96xf32> to vector<8x96xf32>
    %5 = arith.addf %2, %4 : vector<8x96xf32>
    %c0_5 = arith.constant 0 : index
    %c0_6 = arith.constant 0 : index
    %6 = vector.load %arg4[%c0_5, %c0_6] : memref<8x96xf32, #tpu.memory_space<vmem>>, vector<8x96xf32>
    tpu.vector_store %arg4[%c0_5, %c0_6], %5 {strides = array<i32>} : memref<8x96xf32, #tpu.memory_space<vmem>>, vector<8x96xf32>,
    return
  }
  func.func @transform_0(%arg0: i32) -> (i32, i32) {
    %c0_i32 = arith.constant 0 : i32
    %c0_i32_0 = arith.constant 0 : i32
    return %arg0, %c0_i32 : i32, i32
  }
  func.func @transform_1(%arg0: i32) -> (i32, i32) {
    %c0_i32 = arith.constant 0 : i32
    %c0_i32_0 = arith.constant 0 : i32
    %c0_i32_1 = arith.constant 0 : i32
    return %c0_i32, %c0_i32_0 : i32, i32
  }
  func.func @transform_2(%arg0: i32) -> (i32, i32) {
    %c0_i32 = arith.constant 0 : i32
    %c0_i32_0 = arith.constant 0 : i32
    %c0_i32_1 = arith.constant 0 : i32
    return %c0_i32, %c0_i32_0 : i32, i32
  }
  func.func @transform_3(%arg0: i32) -> (i32, i32) {
    %c0_i32 = arith.constant 0 : i32
    %c0_i32_0 = arith.constant 0 : i32
    return %arg0, %c0_i32 : i32, i32
  }
}

</mosaic_0001>

<bundles_post_ra>
// kernel: tpu_custom_call.1
= control target key start
LH: loop header
LB: loop body
LE: loop exit
PB: predicated region body
PF: predicated region fallthrough
CT: control target
= control target key end

     0   :  { %v1034_v3 = vmov 0.0   ;;  %vm1035_vm0 = vmmov 0   ;;  %s1477_s0 = inlined_call_operand.vmem [shape: f32[8,128], index: 0, kind: input, shape index: {}]   ;;  %s1478_s1 = inlined_call_operand.vmem [shape: f32[128,96], index: 1, kind: input, shape index: {}]   ;;  %s1479_s2 = inlined_call_operand.vmem [shape: f32[1,96], index: 2, kind: input, shape index: {}]   ;;  %s1480_s3 = inlined_call_operand.hbm [shape: f32[8,96], index: 3, kind: output, shape index: {}]  }
   0x1   :  { %v31_v0 = vld [vmem:[%s1478_s1 + $0x78] sm:$0xff]  ;;  %v30_v1 = vld [vmem:[%s1478_s1 + $0x70] sm:$0xff]  ;;  %v29_v2 = vld [vmem:[%s1478_s1 + $0x68] sm:$0xff]  ;;  %799 = vmatprep.subr.mxu0 %v1034_v3  ;;  %834 = vmatprep.subr.mxu1 %v1034_v3 }
   0x2   :  { %v1067_v4 = vand.u32 4294901760, %v31_v0  ;;  %v1069_v5 = vand.u32 4294901760, %v30_v1  ;;  %v1071_v6 = vand.u32 4294901760, %v29_v2  ;;  %v28_v7 = vld [vmem:[%s1478_s1 + $0x60] sm:$0xff]  ;;  %v27_v8 = vld [vmem:[%s1478_s1 + $0x58] sm:$0xff]  ;;  %v26_v9 = vld [vmem:[%s1478_s1 + $0x50] sm:$0xff]  ;;  %831 = vmatprep.mubr.msk.f32.mxu0 %vm1035_vm0, %v1034_v3  ;;  %866 = vmatprep.mubr.msk.f32.mxu1 %vm1035_vm0, %v1034_v3 }
   0x3   :  { %v1083_v10 = vand.u32 4294901760, %v28_v7  ;;  %v1085_v11 = vand.u32 4294901760, %v27_v8  ;;  %v1087_v12 = vand.u32 4294901760, %v26_v9  ;;  %v25_v13 = vld [vmem:[%s1478_s1 + $0x48] sm:$0xff]  ;;  %v24_v14 = vld [vmem:[%s1478_s1 + $0x40] sm:$0xff]  ;;  %v23_v19 = vld [vmem:[%s1478_s1 + $0x38] sm:$0xff] }
   0x4   :  { %800 = vmatpush3.msra.mxu0 %v1067_v4  ;;  %v1101_v15 = vsub.f32 %v31_v0, %v1067_v4  ;;  %v1104_v16 = vsub.f32 %v30_v1, %v1069_v5  ;;  %v1106_v17 = vand.u32 4294901760, %v25_v13  ;;  %v1109_v18 = vsub.f32 %v29_v2, %v1071_v6  ;;  %v22_v26 = vld [vmem:[%s1478_s1 + $0x30] sm:$0xff] }
   0x5   :  { %801 = vmatprep.subr.mxu0 %v1034_v3  ;;  %v1116_v20 = vsub.f32 %v28_v7, %v1083_v10  ;;  %v1119_v21 = vsub.f32 %v27_v8, %v1085_v11  ;;  %v1125_v25 = vand.u32 4294901760, %v24_v14  ;;  %v1132_v28 = vand.u32 4294901760, %v23_v19 }
   0x6   :  { %802 = vmatpush3.msra.mxu0 %v1069_v5  ;;  %v133_v22 = vand.u32 4294901760, %v1101_v15  ;;  %v140_v23 = vand.u32 4294901760, %v1104_v16  ;;  %v147_v24 = vand.u32 4294901760, %v1109_v18  ;;  %v1136_v30 = vsub.f32 %v26_v9, %v1087_v12 }
   0x7   :  { %803 = vmatprep.subr.mxu0 %v1034_v3  ;;  %v154_v27 = vand.u32 4294901760, %v1116_v20  ;;  %v161_v29 = vand.u32 4294901760, %v1119_v21  ;;  %v1149_v34 = vsub.f32 %v25_v13, %v1106_v17 }
   0x8   :  { %804 = vmatpush3.msra.mxu0 %v1071_v6  ;;  %v134_v31 = vsub.f32 %v1101_v15, %v133_v22  ;;  %v141_v32 = vsub.f32 %v1104_v16, %v140_v23  ;;  %v148_v33 = vsub.f32 %v1109_v18, %v147_v24 }
   0x9   :  { %8 = vsyncpa [#allocation3], 0  ;;  %805 = vmatprep.subr.mxu0 %v1034_v3  ;;  %v1152_v35 = vand.u32 4294901760, %v22_v26  ;;  %v21_v36 = vld [vmem:[%s1478_s1 + $0x28] sm:$0xff]  ;;  %v155_v39 = vsub.f32 %v1116_v20, %v154_v27  ;;  %v168_v40 = vand.u32 4294901760, %v1136_v30  ;;  %v20_v41 = vld [vmem:[%s1478_s1 + $0x20] sm:$0xff]  ;;  %v162_v42 = vsub.f32 %v1119_v21, %v161_v29 }
   0xa   :  { %806 = vmatpush3.msra.mxu0 %v1083_v10  ;;  %v135_v37 = vand.u32 4294901760, %v134_v31  ;;  %v142_v38 = vand.u32 4294901760, %v141_v32  ;;  %v1170_v43 = vsub.f32 %v24_v14, %v1125_v25  ;;  %v149_v44 = vand.u32 4294901760, %v148_v33  ;;  %v19_v49 = vld [vmem:[%s1478_s1 + $0x18] sm:$0xff]  ;;  %v15_v50 = vld [vmem:[%s1477_s0] sm:$0xff]  ;;  %v18_v54 = vld [vmem:[%s1478_s1 + $0x10] sm:$0xff] }
   0xb   :  { %807 = vmatprep.subr.mxu0 %v1034_v3  ;;  %v1173_v45 = vand.u32 4294901760, %v21_v36  ;;  %v175_v46 = vand.u32 4294901760, %v1149_v34  ;;  %v1177_v47 = vsub.f32 %v23_v19, %v1132_v28  ;;  %v1181_v48 = vand.u32 4294901760, %v20_v41  ;;  %v17_v60 = vld [vmem:[%s1478_s1 + $0x8] sm:$0xff]  ;;  %v16_v7 = vld [vmem:[%s1478_s1] sm:$0xff]  ;;  %s1036_s19 = smov [#allocation2]  }
   0xc   :  { %808 = vmatpush3.msra.mxu0 %v1085_v11  ;;  %835 = vmatpush3.msra.mxu1 %v135_v37  ;;  %v156_v51 = vand.u32 4294901760, %v155_v39  ;;  %v169_v52 = vsub.f32 %v1136_v30, %v168_v40  ;;  %v182_v53 = vand.u32 4294901760, %v1170_v43  ;;  %v1198_v55 = vsub.f32 %v22_v26, %v1152_v35  ;;  %s688_s20 = sshll.u32 %s1036_s19, 4  ;;  %s689_s20 = int_to_ptr.vmem [resolvable:$true] %s688_s20 }
   0xd   :  { %809 = vmatprep.subr.mxu0 %v1034_v3  ;;  %836 = vmatprep.subr.mxu1 %v1034_v3  ;;  %v163_v56 = vand.u32 4294901760, %v162_v42  ;;  %v189_v57 = vand.u32 4294901760, %v1177_v47  ;;  %v176_v58 = vsub.f32 %v1149_v34, %v175_v46  ;;  %v1207_v59 = vand.u32 4294901760, %v19_v49  ;;  %s1012_s21 = scalar_lea.vmem %s689_s20, 128  ;;  %p1017_p1 = scmp.lt.s32.totalorder %s689_s20, %s689_s20 }
   0xe   :  { %810 = vmatpush3.msra.mxu0 %v1087_v12  ;;  %837 = vmatpush3.msra.mxu1 %v142_v38  ;;  %v1213_v61 = vsub.f32 %v21_v36, %v1173_v45  ;;  %v1215_v62 = vand.u32 4294901760, %v15_v50  ;;  %v1219_v63 = vand.u32 4294901760, %v18_v54  ;;  %v170_v0 = vand.u32 4294901760, %v169_v52  ;;  %p1013_p0 = scmp.ne.s32.totalorder %s689_s20, %s1012_s21  ;;  %p1018_p2 = scmp.lt.s32.totalorder %s1012_s21, %s1012_s21 }
   0xf   :  { %811 = vmatprep.subr.mxu0 %v1034_v3  ;;  %838 = vmatprep.subr.mxu1 %v1034_v3  ;;  %v183_v1 = vsub.f32 %v1170_v43, %v182_v53  ;;  %v196_v2 = vand.u32 4294901760, %v1198_v55  ;;  %v1230_v8 = vsub.f32 %v20_v41, %v1181_v48  ;;  %v190_v9 = vsub.f32 %v1177_v47, %v189_v57 }
  0x10   :  { %812 = vmatpush3.msra.mxu0 %v1106_v17  ;;  %839 = vmatpush3.msra.mxu1 %v149_v44  ;;  %v1237_v13 = vand.u32 4294901760, %v17_v60  ;;  %v177_v14 = vand.u32 4294901760, %v176_v58  ;;  %v203_v19 = vand.u32 4294901760, %v1213_v61  ;;  %v1242_v26 = vsub.f32 %v15_v50, %v1215_v62  ;;  %p1019_p3 = por %p1018_p2, %p1017_p1 }
  0x11   :  { %813 = vmatprep.subr.mxu0 %v1034_v3  ;;  %840 = vmatprep.subr.mxu1 %v1034_v3  ;;  %v1245_v31 = vsub.f32 %v19_v49, %v1207_v59  ;;  %v1249_v32 = vand.u32 4294901760, %v16_v7  ;;  %v184_v33 = vand.u32 4294901760, %v183_v1  ;;  %v197_v36 = vsub.f32 %v1198_v55, %v196_v2 }
  0x12   :  { %814 = vmatpush3.msra.mxu0 %v1125_v25  ;;  %841 = vmatpush3.msra.mxu1 %v156_v51  ;;  %v210_v37 = vand.u32 4294901760, %v1230_v8  ;;  %v1257_v38 = vsub.f32 %v18_v54, %v1219_v63  ;;  %v191_v39 = vand.u32 4294901760, %v190_v9  ;;  %v204_v41 = vsub.f32 %v1213_v61, %v203_v19  ;;  %p1020_p4 = pnand %p1019_p3, %p1013_p0 }
  0x13   :  { %815 = vmatprep.subr.mxu0 %v1034_v3  ;;  %842 = vmatprep.subr.mxu1 %v1034_v3  ;;  %v122_v42 = vand.u32 4294901760, %v1242_v26  ;;  %v217_v44 = vand.u32 4294901760, %v1245_v31  ;;  %v1268_v49 = vsub.f32 %v17_v60, %v1237_v13  ;;  %v198_v50 = vand.u32 4294901760, %v197_v36 }
  0x14   :  { %816 = vmatpush3.msra.mxu0 %v1132_v28  ;;  %843 = vmatpush3.msra.mxu1 %v163_v56  ;;  %v211_v51 = vsub.f32 %v1230_v8, %v210_v37  ;;  %v224_v52 = vand.u32 4294901760, %v1257_v38  ;;  %v1278_v54 = vsub.f32 %v16_v7, %v1249_v32  ;;  %v205_v56 = vand.u32 4294901760, %v204_v41 }
  0x15   :  { %817 = vmatprep.subr.mxu0 %v1034_v3  ;;  %844 = vmatprep.subr.mxu1 %v1034_v3  ;;  %v123_v58 = vsub.f32 %v1242_v26, %v122_v42  ;;  %v218_v60 = vsub.f32 %v1245_v31, %v217_v44  ;;  %vm680_vm1 = vcmask 785408  }
  0x16   :  { %818 = vmatpush3.msra.mxu0 %v1152_v35  ;;  %845 = vmatpush3.msra.mxu1 %v170_v0  ;;  %v231_v0 = vand.u32 4294901760, %v1268_v49  ;;  %v212_v1 = vand.u32 4294901760, %v211_v51  ;;  %v225_v7 = vsub.f32 %v1257_v38, %v224_v52  ;;  %v238_v9 = vand.u32 4294901760, %v1278_v54 }
  0x17   :  { %819 = vmatprep.subr.mxu0 %v1034_v3  ;;  %846 = vmatprep.subr.mxu1 %v1034_v3 }
  0x18   :  { %820 = vmatpush3.msra.mxu0 %v1173_v45  ;;  %847 = vmatpush3.msra.mxu1 %v177_v14  ;;  %v124_v14 = vand.u32 4294901760, %v123_v58  ;;  %v232_v36 = vsub.f32 %v1268_v49, %v231_v0  ;;  %v239_v41 = vsub.f32 %v1278_v54, %v238_v9 }
  0x19   :  { %821 = vmatprep.subr.mxu0 %v1034_v3  ;;  %848 = vmatprep.subr.mxu1 %v1034_v3 }
  0x1a   :  { %822 = vmatpush3.msra.mxu0 %v1181_v48  ;;  %849 = vmatpush3.msra.mxu1 %v184_v33  ;;  %v219_v33 = vand.u32 4294901760, %v218_v60  ;;  %v240_v51 = vand.u32 4294901760, %v239_v41 }
  0x1b   :  { %823 = vmatprep.subr.mxu0 %v1034_v3  ;;  %850 = vmatprep.subr.mxu1 %v1034_v3 }
  0x1c   :  { %824 = vmatpush3.msra.mxu0 %v1207_v59  ;;  %851 = vmatpush3.msra.mxu1 %v191_v39  ;;  %v226_v39 = vand.u32 4294901760, %v225_v7 }
  0x1d   :  { %825 = vmatprep.subr.mxu0 %v1034_v3  ;;  %852 = vmatprep.subr.mxu1 %v1034_v3 }
  0x1e   :  { %826 = vmatpush3.msra.mxu0 %v1219_v63  ;;  %853 = vmatpush3.msra.mxu1 %v198_v50  ;;  %v233_v50 = vand.u32 4294901760, %v232_v36 }
  0x1f   :  { %827 = vmatprep.subr.mxu0 %v1034_v3  ;;  %854 = vmatprep.subr.mxu1 %v1034_v3 }
  0x20   :  { %828 = vmatpush3.msra.mxu0 %v1237_v13  ;;  %855 = vmatpush3.msra.mxu1 %v205_v56 }
  0x21   :  { %829 = vmatprep.subr.mxu0 %v1034_v3  ;;  %856 = vmatprep.subr.mxu1 %v1034_v3 }
  0x22   :  { %830 = vmatpush3.msra.mxu0 %v1249_v32  ;;  %857 = vmatpush3.msra.mxu1 %v212_v1 }
  0x23   :  { %858 = vmatprep.subr.mxu1 %v1034_v3  ;;  %869 = vmatprep.subr.mxu0 %v1034_v3 }
  0x24   :  { %832 = vmatmul.mubr.f32.vlgmr.msra.gmra.mxu0 %v124_v14  ;;  %859 = vmatpush3.msra.mxu1 %v219_v33 }
  0x25   :  { %870 = vmatpush3.msra.mxu0 %v1101_v15  ;;  %860 = vmatprep.subr.mxu1 %v1034_v3 }
  0x26   :  { %871 = vmatprep.subr.mxu0 %v1034_v3  ;;  %861 = vmatpush3.msra.mxu1 %v226_v39 }
  0x27   :  { %872 = vmatpush3.msra.mxu0 %v1104_v16  ;;  %862 = vmatprep.subr.mxu1 %v1034_v3 }
  0x28   :  { %873 = vmatprep.subr.mxu0 %v1034_v3  ;;  %863 = vmatpush3.msra.mxu1 %v233_v50 }
  0x29   :  { %874 = vmatpush3.msra.mxu0 %v1109_v18  ;;  %864 = vmatprep.subr.mxu1 %v1034_v3 }
  0x2a   :  { %875 = vmatprep.subr.mxu0 %v1034_v3  ;;  %865 = vmatpush3.msra.mxu1 %v240_v51 }
  0x2b   :  { %876 = vmatpush3.msra.mxu0 %v1116_v20  ;;  %867 = vmatmul.mubr.f32.vlgmr.msra.gmra.mxu1 %v1215_v62 }
  0x2c   :  { %877 = vmatprep.subr.mxu0 %v1034_v3  ;;  %904 = vmatprep.subr.mxu1 %v1034_v3 }
  0x2d   :  { %878 = vmatpush3.msra.mxu0 %v1119_v21  ;;  %905 = vmatpush3.msra.mxu1 %v1067_v4 }
  0x2e   :  { %879 = vmatprep.subr.mxu0 %v1034_v3  ;;  %906 = vmatprep.subr.mxu1 %v1034_v3 }
  0x2f   :  { %880 = vmatpush3.msra.mxu0 %v1136_v30  ;;  %907 = vmatpush3.msra.mxu1 %v1069_v5 }
  0x30   :  { %881 = vmatprep.subr.mxu0 %v1034_v3  ;;  %908 = vmatprep.subr.mxu1 %v1034_v3 }
  0x31   :  { %882 = vmatpush3.msra.mxu0 %v1149_v34  ;;  %909 = vmatpush3.msra.mxu1 %v1071_v6 }
  0x32   :  { %883 = vmatprep.subr.mxu0 %v1034_v3  ;;  %910 = vmatprep.subr.mxu1 %v1034_v3 }
  0x33   :  { %884 = vmatpush3.msra.mxu0 %v1170_v43  ;;  %911 = vmatpush3.msra.mxu1 %v1083_v10 }
  0x34   :  { %885 = vmatprep.subr.mxu0 %v1034_v3  ;;  %912 = vmatprep.subr.mxu1 %v1034_v3 }
  0x35   :  { %886 = vmatpush3.msra.mxu0 %v1177_v47  ;;  %913 = vmatpush3.msra.mxu1 %v1085_v11 }
  0x36   :  { %887 = vmatprep.subr.mxu0 %v1034_v3  ;;  %914 = vmatprep.subr.mxu1 %v1034_v3 }
  0x37   :  { %888 = vmatpush3.msra.mxu0 %v1198_v55  ;;  %915 = vmatpush3.msra.mxu1 %v1087_v12 }
  0x38   :  { %889 = vmatprep.subr.mxu0 %v1034_v3  ;;  %916 = vmatprep.subr.mxu1 %v1034_v3 }
  0x39   :  { %890 = vmatpush3.msra.mxu0 %v1213_v61  ;;  %917 = vmatpush3.msra.mxu1 %v1106_v17 }
  0x3a   :  { %891 = vmatprep.subr.mxu0 %v1034_v3  ;;  %918 = vmatprep.subr.mxu1 %v1034_v3 }
  0x3b   :  { %892 = vmatpush3.msra.mxu0 %v1230_v8  ;;  %919 = vmatpush3.msra.mxu1 %v1125_v25 }
  0x3c   :  { %893 = vmatprep.subr.mxu0 %v1034_v3  ;;  %920 = vmatprep.subr.mxu1 %v1034_v3 }
  0x3d   :  { %894 = vmatpush3.msra.mxu0 %v1245_v31  ;;  %921 = vmatpush3.msra.mxu1 %v1132_v28 }
  0x3e   :  { %895 = vmatprep.subr.mxu0 %v1034_v3  ;;  %922 = vmatprep.subr.mxu1 %v1034_v3 }
  0x3f   :  { %896 = vmatpush3.msra.mxu0 %v1257_v38  ;;  %923 = vmatpush3.msra.mxu1 %v1152_v35 }
  0x40   :  { %897 = vmatprep.subr.mxu0 %v1034_v3  ;;  %924 = vmatprep.subr.mxu1 %v1034_v3 }
  0x41   :  { %898 = vmatpush3.msra.mxu0 %v1268_v49  ;;  %925 = vmatpush3.msra.mxu1 %v1173_v45 }
  0x42   :  { %899 = vmatprep.subr.mxu0 %v1034_v3  ;;  %926 = vmatprep.subr.mxu1 %v1034_v3 }
  0x43   :  { %900 = vmatpush3.msra.mxu0 %v1278_v54  ;;  %901 = vmatprep.mubr.msk.f32.mxu0 %vm1035_vm0, %v1034_v3 }
  0x44   :  { %927 = vmatpush3.msra.mxu1 %v1181_v48  ;;  %902 = vmatmul.mubr.f32.vlgmr.msra.gmra.mxu0 %v1242_v26 }
  0x45   :  { %928 = vmatprep.subr.mxu1 %v1034_v3  ;;  %939 = vmatprep.subr.mxu0 %v1034_v3 }
  0x46   :  { %929 = vmatpush3.msra.mxu1 %v1207_v59  ;;  %940 = vmatpush3.msra.mxu0 %v133_v22 }
  0x47   :  { %930 = vmatprep.subr.mxu1 %v1034_v3  ;;  %941 = vmatprep.subr.mxu0 %v1034_v3 }
  0x48   :  { %931 = vmatpush3.msra.mxu1 %v1219_v63  ;;  %942 = vmatpush3.msra.mxu0 %v140_v23 }
  0x49   :  { %932 = vmatprep.subr.mxu1 %v1034_v3  ;;  %943 = vmatprep.subr.mxu0 %v1034_v3 }
  0x4a   :  { %933 = vmatpush3.msra.mxu1 %v1237_v13  ;;  %944 = vmatpush3.msra.mxu0 %v147_v24 }
  0x4b   :  { %934 = vmatprep.subr.mxu1 %v1034_v3  ;;  %945 = vmatprep.subr.mxu0 %v1034_v3 }
  0x4c   :  { %935 = vmatpush3.msra.mxu1 %v1249_v32  ;;  %936 = vmatprep.mubr.msk.f32.mxu1 %vm1035_vm0, %v1034_v3 }
  0x4d   :  { %946 = vmatpush3.msra.mxu0 %v154_v27  ;;  %937 = vmatmul.mubr.f32.vlgmr.msra.gmra.mxu1 %v122_v42 }
  0x4e   :  { %947 = vmatprep.subr.mxu0 %v1034_v3  ;;  %974 = vmatprep.subr.mxu1 %v1034_v3 }
  0x4f   :  { %948 = vmatpush3.msra.mxu0 %v161_v29  ;;  %975 = vmatpush3.msra.mxu1 %v1067_v4 }
  0x50   :  { %949 = vmatprep.subr.mxu0 %v1034_v3  ;;  %976 = vmatprep.subr.mxu1 %v1034_v3 }
  0x51   :  { %950 = vmatpush3.msra.mxu0 %v168_v40  ;;  %977 = vmatpush3.msra.mxu1 %v1069_v5 }
  0x52   :  { %951 = vmatprep.subr.mxu0 %v1034_v3  ;;  %978 = vmatprep.subr.mxu1 %v1034_v3 }
  0x53   :  { %952 = vmatpush3.msra.mxu0 %v175_v46  ;;  %979 = vmatpush3.msra.mxu1 %v1071_v6 }
  0x54   :  { %953 = vmatprep.subr.mxu0 %v1034_v3  ;;  %980 = vmatprep.subr.mxu1 %v1034_v3 }
  0x55   :  { %954 = vmatpush3.msra.mxu0 %v182_v53  ;;  %981 = vmatpush3.msra.mxu1 %v1083_v10 }
  0x56   :  { %955 = vmatprep.subr.mxu0 %v1034_v3  ;;  %982 = vmatprep.subr.mxu1 %v1034_v3 }
  0x57   :  { %956 = vmatpush3.msra.mxu0 %v189_v57  ;;  %983 = vmatpush3.msra.mxu1 %v1085_v11 }
  0x58   :  { %957 = vmatprep.subr.mxu0 %v1034_v3  ;;  %984 = vmatprep.subr.mxu1 %v1034_v3 }
  0x59   :  { %958 = vmatpush3.msra.mxu0 %v196_v2  ;;  %985 = vmatpush3.msra.mxu1 %v1087_v12 }
  0x5a   :  { %959 = vmatprep.subr.mxu0 %v1034_v3  ;;  %986 = vmatprep.subr.mxu1 %v1034_v3 }
  0x5b   :  { %960 = vmatpush3.msra.mxu0 %v203_v19  ;;  %987 = vmatpush3.msra.mxu1 %v1106_v17  ;;  %v696_v17 = vld [vmem:[%s1479_s2] ss:$0 sm:$0xff] }
  0x5c   :  { %961 = vmatprep.subr.mxu0 %v1034_v3  ;;  %988 = vmatprep.subr.mxu1 %v1034_v3 }
  0x5d   :  { %962 = vmatpush3.msra.mxu0 %v210_v37  ;;  %989 = vmatpush3.msra.mxu1 %v1125_v25 }
  0x5e   :  { %963 = vmatprep.subr.mxu0 %v1034_v3  ;;  %990 = vmatprep.subr.mxu1 %v1034_v3 }
  0x5f   :  { %964 = vmatpush3.msra.mxu0 %v217_v44  ;;  %991 = vmatpush3.msra.mxu1 %v1132_v28 }
  0x60   :  { %965 = vmatprep.subr.mxu0 %v1034_v3  ;;  %992 = vmatprep.subr.mxu1 %v1034_v3 }
  0x61   :  { %966 = vmatpush3.msra.mxu0 %v224_v52  ;;  %993 = vmatpush3.msra.mxu1 %v1152_v35 }
  0x62   :  { %967 = vmatprep.subr.mxu0 %v1034_v3  ;;  %994 = vmatprep.subr.mxu1 %v1034_v3 }
  0x63   :  { %968 = vmatpush3.msra.mxu0 %v231_v0  ;;  %995 = vmatpush3.msra.mxu1 %v1173_v45 }
  0x64   :  { %969 = vmatprep.subr.mxu0 %v1034_v3  ;;  %996 = vmatprep.subr.mxu1 %v1034_v3 }
  0x65   :  { %970 = vmatpush3.msra.mxu0 %v238_v9  ;;  %971 = vmatprep.mubr.msk.f32.mxu0 %vm1035_vm0, %v1034_v3 }
  0x66   :  { %997 = vmatpush3.msra.mxu1 %v1181_v48  ;;  %972 = vmatmul.mubr.f32.vlgmr.msra.gmra.mxu0 %v1215_v62 }
  0x67   :  { %998 = vmatprep.subr.mxu1 %v1034_v3  ;;  %1006 = vmatprep.mubr.msk.f32.mxu1 %vm1035_vm0, %v1034_v3 }
  0x68   :  { %999 = vmatpush3.msra.mxu1 %v1207_v59 }
  0x69   :  { %1000 = vmatprep.subr.mxu1 %v1034_v3 }
  0x6a   :  { %1001 = vmatpush3.msra.mxu1 %v1219_v63 }
  0x6b   :  { %1002 = vmatprep.subr.mxu1 %v1034_v3 }
  0x6c   :  { %1003 = vmatpush3.msra.mxu1 %v1237_v13 }
  0x6d   :  { %1004 = vmatprep.subr.mxu1 %v1034_v3 }
  0x6e   :  { %1005 = vmatpush3.msra.mxu1 %v1249_v32 }
  0x6f   :  { %1007 = vmatmul.mubr.f32.vlgmr.msra.gmra.mxu1 %v1215_v62 }
  0xe4   :  { %v126_v4 = vpop.f32.mrf.mxu0 }
  0xe5   :  { %v127_v18 = vadd.f32 %v696_v17, %v126_v4 }
  0xe6   :  { %v833_v5 = vpop.f32.mrf.mxu0 }
  0xeb   :  { %v277_v6 = vpop.f32.mrf.mxu1 }
  0xec   :  { %v278_v21 = vadd.f32 %v277_v6, %v127_v18 }
  0xed   :  { %v868_v10 = vpop.f32.mrf.mxu1 }
 0x104   :  { %v381_v11 = vpop.f32.mrf.mxu0 }
 0x105   :  { %v382_v22 = vadd.f32 %v381_v11, %v278_v21 }
 0x106   :  { %v903_v12 = vpop.f32.mrf.mxu0 }
 0x10d   :  { %v470_v15 = vpop.f32.mrf.mxu1 }
 0x10e   :  { %v471_v23 = vadd.f32 %v470_v15, %v382_v22 }
 0x10f   :  { %v938_v16 = vpop.f32.mrf.mxu1 }
 0x126   :  { %v589_v20 = vpop.f32.mrf.mxu0 }
 0x127   :  { %v590_v24 = vadd.f32 %v589_v20, %v471_v23 }
 0x128   :  { %v973_v3 = vpop.f32.mrf.mxu0 }
 0x12f   :  { %v676_v25 = vpop.f32.mrf.mxu1 }
 0x130   :  { %v677_v27 = vadd.f32 %v676_v25, %v590_v24 }
 0x131   :  { %v1008_v28 = vpop.f32.mrf.mxu1 }
 0x132   :  { %681 = vst.msk [vmem:[#allocation2] sm:$0xff] %vm680_vm1, %v677_v27 }
 0x133   :  { %1023 = shalt.err (!%p1020_p4)
}
 0x134   :  { %691 = dma.vmem_to_hbm [thread:$0]  %s689_s20, 128, %s1480_s3, [#allocation3]  }
 0x135   :  { %1032 = dma.done.wait [#allocation3], 128  }
 0x136   :  { %1033 = vsyncadd [#allocation3], 4294967168 }
 0x137   :  { %695 = vsyncpa [#allocation3], 1 }

</bundles_post_ra>
